<compile_context>
chip_gen: v7x
topology: tpu7x:2x2x1
jax: 0.10.0
libtpu: 0.0.40
codegen_flags: <defaults>
</compile_context>

<pallas_src>
import numpy as np
import jax
import jax.numpy as jnp
from jax.experimental import pallas as pl
from jax.experimental.pallas import tpu as pltpu

INPUT_SIZE = 3
HIDDEN = 32


# ----------------------------- Pallas kernel --------------------------------
def lstm_attn_kernel(x_ref, wih_ref, whh_ref, wc_ref, wh_ref, fb_ref, y_ref):
    """Whole forward pass for one (small) batch.

    x_ref   : (T*B_pad, I_pad)  time-major, flattened; column INPUT_SIZE is all-ones
    wih_ref : (I_pad, 4H)       input->gates (PyTorch order i,f,g,o); row INPUT_SIZE
                                holds b_ih+b_hh; g-gate columns pre-scaled by 2
    whh_ref : (H, 4H)           hidden->gates; g-gate columns pre-scaled by 2
    wc_ref  : (1, H)            fc weight, context half (row vector)
    wh_ref  : (1, H)            fc weight, h_n half     (row vector)
    fb_ref  : (1, 1)            fc bias
    y_ref   : (B_pad, 1)        output
    """
    B_pad = y_ref.shape[0]
    T = x_ref.shape[0] // B_pad
    H = whh_ref.shape[0]

    # Hoisted input projection (bias folded in via ones column / bias row);
    # one batched MXU matmul, result stays live in vregs (~8 vregs for T=8).
    pre = jnp.dot(x_ref[...], wih_ref[...],
                  preferred_element_type=jnp.float32)          # (T*B_pad, 4H)

    whh = whh_ref[...]                                         # (H, 4H)

    h = jnp.zeros((B_pad, H), jnp.float32)
    c = jnp.zeros((B_pad, H), jnp.float32)
    outs = []
    # T is static (8): fully unrolled recurrence, state carried in vregs.
    for t in range(T):
        gates = pre[t * B_pad:(t + 1) * B_pad, :] + jnp.dot(
            h, whh, preferred_element_type=jnp.float32)        # (B_pad, 4H)
        # One full-width sigmoid covers all gates; the g strip arrives
        # pre-scaled by 2, so tanh(g) = 2*sigmoid(2g) - 1.
        s_all = jax.nn.sigmoid(gates)
        i_g = s_all[:, 0 * H:1 * H]
        f_g = s_all[:, 1 * H:2 * H]
        g_g = 2.0 * s_all[:, 2 * H:3 * H] - 1.0
        o_g = s_all[:, 3 * H:4 * H]
        c = f_g * c + i_g * g_g
        h = o_g * jnp.tanh(c)
        outs.append(h)

    h_n = h                                                    # (B_pad, H)

    # ---- attention over the sequence of hidden states (all live in vregs) ----
    # scores[b, t] = <outputs[b, t, :], h_n[b, :]>   (torch.bmm)
    scores = [jnp.sum(o * h_n, axis=-1, keepdims=True) for o in outs]  # T x (B_pad,1)
    m = scores[0]
    for s in scores[1:]:
        m = jnp.maximum(m, s)
    exps = [jnp.exp(s - m) for s in scores]
    denom = exps[0]
    for e in exps[1:]:
        denom = denom + e
    inv = 1.0 / denom                                          # (B_pad, 1)

    # context[b, :] = sum_t weights[b, t] * outputs[b, t, :]
    context = jnp.zeros_like(h_n)
    for e, o in zip(exps, outs):
        context = context + (e * inv) * o                      # (B_pad, H)

    # fc(cat([context, h_n], dim=1)) == sum_lanes(context*Wc + h_n*Wh) + b
    # (VPU mul + single cross-lane reduce; no degenerate N=1 MXU matmuls)
    y = jnp.sum(context * wc_ref[...] + h_n * wh_ref[...], axis=-1, keepdims=True)
    y_ref[...] = y + fb_ref[...]


# ------------------------------- wrapper -------------------------------------
@jax.jit
def lstm_attn_forward(x, params):
    """x: (B, T, INPUT_SIZE) float32  ->  (B, 1) float32."""
    B, T, I = x.shape
    H = HIDDEN
    assert I == INPUT_SIZE

    B_pad = max(8, ((B + 7) // 8) * 8)
    I_pad = 8  # zero-pad tiny contraction dim; column I carries the bias "ones"

    # time-major, padded, flattened input: (T*B_pad, I_pad)
    x_tm = jnp.transpose(x, (1, 0, 2)).astype(jnp.float32)     # (T, B, I)
    x_p = jnp.zeros((T, B_pad, I_pad), jnp.float32)
    x_p = x_p.at[:, :B, :I].set(x_tm)
    x_p = x_p.at[:, :, I].set(1.0)                             # bias column
    x_flat = x_p.reshape(T * B_pad, I_pad)

    # PyTorch layouts: weight_ih (4H, I), weight_hh (4H, H), fc.weight (1, 2H).
    # Fold bias into W_ih row I; pre-scale g-gate columns by 2 (tanh identity).
    g_scale = jnp.ones((4 * H,), jnp.float32).at[2 * H:3 * H].set(2.0)
    w_ih = jnp.zeros((I_pad, 4 * H), jnp.float32)
    w_ih = w_ih.at[:I, :].set(params["w_ih"].T)
    w_ih = w_ih.at[I, :].set(params["b_ih"] + params["b_hh"])
    w_ih = w_ih * g_scale[None, :]
    w_hh = params["w_hh"].T * g_scale[None, :]                 # (H, 4H)
    wc = params["fc_w"][:, :H].reshape(1, H)                   # context half
    wh = params["fc_w"][:, H:].reshape(1, H)                   # h_n half
    fb = params["fc_b"].reshape(1, 1)

    vmem = pl.BlockSpec(memory_space=pltpu.MemorySpace.VMEM)

    # Advisory cost estimate so XLA schedules the wrapper pad/transpose around us.
    flops = (2 * T * B_pad * I_pad * 4 * H          # hoisted input projection
             + 2 * T * B_pad * H * 4 * H            # recurrent matmuls
             + 12 * T * B_pad * H                   # gate elementwise + attention
             + 4 * B_pad * H)                       # output head
    transcendentals = T * B_pad * 4 * H + T * B_pad * H + T * B_pad
    bytes_accessed = 4 * (x_flat.size + w_ih.size + w_hh.size
                          + wc.size + wh.size + fb.size + B_pad)

    out = pl.pallas_call(
        lstm_attn_kernel,
        out_shape=jax.ShapeDtypeStruct((B_pad, 1), jnp.float32),
        in_specs=[vmem] * 6,
        out_specs=vmem,
        cost_estimate=pl.CostEstimate(flops=flops,
                                      transcendentals=transcendentals,
                                      bytes_accessed=bytes_accessed),
    )(x_flat, w_ih, w_hh, wc, wh, fb)

    return out[:B]


# --------------------------- pure-JAX reference -------------------------------
def lstm_attn_reference(x, params):
    B, T, I = x.shape
    H = HIDDEN
    w_ih, w_hh = params["w_ih"], params["w_hh"]
    b_ih, b_hh = params["b_ih"], params["b_hh"]
    h = jnp.zeros((B, H), jnp.float32)
    c = jnp.zeros((B, H), jnp.float32)
    outs = []
    for t in range(T):
        g = x[:, t] @ w_ih.T + b_ih + h @ w_hh.T + b_hh
        i_g = jax.nn.sigmoid(g[:, :H])
        f_g = jax.nn.sigmoid(g[:, H:2 * H])
        g_g = jnp.tanh(g[:, 2 * H:3 * H])
        o_g = jax.nn.sigmoid(g[:, 3 * H:])
        c = f_g * c + i_g * g_g
        h = o_g * jnp.tanh(c)
        outs.append(h)
    outs = jnp.stack(outs, axis=1)                             # (B, T, H)
    scores = jnp.einsum("bth,bh->bt", outs, h)
    w = jax.nn.softmax(scores, axis=1)
    ctx = jnp.einsum("bt,bth->bh", w, outs)
    comb = jnp.concatenate([ctx, h], axis=1)
    return comb @ params["fc_w"].T + params["fc_b"]


# --------------------------------- main ---------------------------------------
if __name__ == "__main__":
    key = jax.random.PRNGKey(0)
    kx, k1, k2, k3, k4, k5, k6 = jax.random.split(key, 7)

    B, T, I, H = 2, 8, INPUT_SIZE, HIDDEN
    bound = 1.0 / np.sqrt(H)   # PyTorch default LSTM/Linear init range

    params = {
        "w_ih": jax.random.uniform(k1, (4 * H, I), jnp.float32, -bound, bound),
        "w_hh": jax.random.uniform(k2, (4 * H, H), jnp.float32, -bound, bound),
        "b_ih": jax.random.uniform(k3, (4 * H,), jnp.float32, -bound, bound),
        "b_hh": jax.random.uniform(k4, (4 * H,), jnp.float32, -bound, bound),
        "fc_w": jax.random.uniform(k5, (1, 2 * H), jnp.float32,
                                   -1.0 / np.sqrt(2 * H), 1.0 / np.sqrt(2 * H)),
        "fc_b": jax.random.uniform(k6, (1,), jnp.float32,
                                   -1.0 / np.sqrt(2 * H), 1.0 / np.sqrt(2 * H)),
    }

    x = jax.random.normal(kx, (B, T, I), jnp.float32)

    y = jax.block_until_ready(lstm_attn_forward(x, params))
    y_ref = jax.block_until_ready(lstm_attn_reference(x, params))

    assert y.shape == (B, 1), y.shape
    np.testing.assert_allclose(np.asarray(y), np.asarray(y_ref),
                               rtol=1e-3, atol=1e-3)
    print("KERNEL_OK")
</pallas_src>

<mosaic_0001>
module attributes {stable_mosaic.version = 11 : i64} {
  func.func @lstm_attn_kernel(%arg0: memref<64x8xf32, #tpu.memory_space<vmem>>, %arg1: memref<8x128xf32, #tpu.memory_space<vmem>>, %arg2: memref<32x128xf32, #tpu.memory_space<vmem>>, %arg3: memref<1x32xf32, #tpu.memory_space<vmem>>, %arg4: memref<1x32xf32, #tpu.memory_space<vmem>>, %arg5: memref<1x1xf32, #tpu.memory_space<vmem>>, %arg6: memref<8x1xf32, #tpu.memory_space<vmem>>) attributes {dimension_semantics = [], scalar_prefetch = 0 : i64, scratch_operands = 0 : i64, tpu.core_type = #tpu.core_type<tc>} {
    %c0 = arith.constant 0 : index
    %c0_0 = arith.constant 0 : index
    %0 = vector.load %arg0[%c0, %c0_0] : memref<64x8xf32, #tpu.memory_space<vmem>>, vector<64x8xf32>
    %c0_1 = arith.constant 0 : index
    %c0_2 = arith.constant 0 : index
    %1 = vector.load %arg1[%c0_1, %c0_2] : memref<8x128xf32, #tpu.memory_space<vmem>>, vector<8x128xf32>
    %cst = arith.constant dense<0.000000e+00> : vector<64x128xf32>
    %2 = tpu.matmul %0, %1, %cst {dimension_numbers = #tpu.dot_dimension_numbers<[1], [0], [0], [1], [0, 0, 1, 1], [], []>} : vector<64x8xf32>, vector<8x128xf32>, vector<64x128xf32> -> vector<64x128xf32>
    %c0_3 = arith.constant 0 : index
    %c0_4 = arith.constant 0 : index
    %3 = vector.load %arg2[%c0_3, %c0_4] : memref<32x128xf32, #tpu.memory_space<vmem>>, vector<32x128xf32>
    %cst_5 = arith.constant 0.000000e+00 : f32
    %4 = vector.broadcast %cst_5 : f32 to vector<8x32xf32>
    %cst_6 = arith.constant 0.000000e+00 : f32
    %5 = vector.broadcast %cst_6 : f32 to vector<8x32xf32>
    %6 = vector.extract_strided_slice %2 {offsets = [0, 0], sizes = [8, 128], strides = [1, 1]} : vector<64x128xf32> to vector<8x128xf32>
    %cst_7 = arith.constant dense<0.000000e+00> : vector<8x128xf32>
    %7 = tpu.matmul %4, %3, %cst_7 {dimension_numbers = #tpu.dot_dimension_numbers<[1], [0], [0], [1], [0, 0, 1, 1], [], []>} : vector<8x32xf32>, vector<32x128xf32>, vector<8x128xf32> -> vector<8x128xf32>
    %8 = arith.addf %6, %7 : vector<8x128xf32>
    %9 = arith.negf %8 : vector<8x128xf32>
    %10 = math.exp %9 : vector<8x128xf32>
    %cst_8 = arith.constant 1.000000e+00 : f32
    %11 = vector.broadcast %cst_8 : f32 to vector<8x128xf32>
    %12 = arith.addf %11, %10 : vector<8x128xf32>
    %13 = arith.divf %11, %12 : vector<8x128xf32>
    %14 = vector.extract_strided_slice %13 {offsets = [0, 0], sizes = [8, 32], strides = [1, 1]} : vector<8x128xf32> to vector<8x32xf32>
    %15 = vector.extract_strided_slice %13 {offsets = [0, 32], sizes = [8, 32], strides = [1, 1]} : vector<8x128xf32> to vector<8x32xf32>
    %16 = vector.extract_strided_slice %13 {offsets = [0, 64], sizes = [8, 32], strides = [1, 1]} : vector<8x128xf32> to vector<8x32xf32>
    %cst_9 = arith.constant 2.000000e+00 : f32
    %17 = vector.broadcast %cst_9 : f32 to vector<8x32xf32>
    %18 = arith.mulf %17, %16 : vector<8x32xf32>
    %cst_10 = arith.constant 1.000000e+00 : f32
    %19 = vector.broadcast %cst_10 : f32 to vector<8x32xf32>
    %20 = arith.subf %18, %19 : vector<8x32xf32>
    %21 = vector.extract_strided_slice %13 {offsets = [0, 96], sizes = [8, 32], strides = [1, 1]} : vector<8x128xf32> to vector<8x32xf32>
    %22 = arith.mulf %15, %5 : vector<8x32xf32>
    %23 = arith.mulf %14, %20 : vector<8x32xf32>
    %24 = arith.addf %22, %23 : vector<8x32xf32>
    %25 = math.tanh %24 : vector<8x32xf32>
    %26 = arith.mulf %21, %25 : vector<8x32xf32>
    %27 = vector.extract_strided_slice %2 {offsets = [8, 0], sizes = [8, 128], strides = [1, 1]} : vector<64x128xf32> to vector<8x128xf32>
    %cst_11 = arith.constant dense<0.000000e+00> : vector<8x128xf32>
    %28 = tpu.matmul %26, %3, %cst_11 {dimension_numbers = #tpu.dot_dimension_numbers<[1], [0], [0], [1], [0, 0, 1, 1], [], []>} : vector<8x32xf32>, vector<32x128xf32>, vector<8x128xf32> -> vector<8x128xf32>
    %29 = arith.addf %27, %28 : vector<8x128xf32>
    %30 = arith.negf %29 : vector<8x128xf32>
    %31 = math.exp %30 : vector<8x128xf32>
    %cst_12 = arith.constant 1.000000e+00 : f32
    %32 = vector.broadcast %cst_12 : f32 to vector<8x128xf32>
    %33 = arith.addf %32, %31 : vector<8x128xf32>
    %34 = arith.divf %32, %33 : vector<8x128xf32>
    %35 = vector.extract_strided_slice %34 {offsets = [0, 0], sizes = [8, 32], strides = [1, 1]} : vector<8x128xf32> to vector<8x32xf32>
    %36 = vector.extract_strided_slice %34 {offsets = [0, 32], sizes = [8, 32], strides = [1, 1]} : vector<8x128xf32> to vector<8x32xf32>
    %37 = vector.extract_strided_slice %34 {offsets = [0, 64], sizes = [8, 32], strides = [1, 1]} : vector<8x128xf32> to vector<8x32xf32>
    %cst_13 = arith.constant 2.000000e+00 : f32
    %38 = vector.broadcast %cst_13 : f32 to vector<8x32xf32>
    %39 = arith.mulf %38, %37 : vector<8x32xf32>
    %cst_14 = arith.constant 1.000000e+00 : f32
    %40 = vector.broadcast %cst_14 : f32 to vector<8x32xf32>
    %41 = arith.subf %39, %40 : vector<8x32xf32>
    %42 = vector.extract_strided_slice %34 {offsets = [0, 96], sizes = [8, 32], strides = [1, 1]} : vector<8x128xf32> to vector<8x32xf32>
    %43 = arith.mulf %36, %24 : vector<8x32xf32>
    %44 = arith.mulf %35, %41 : vector<8x32xf32>
    %45 = arith.addf %43, %44 : vector<8x32xf32>
    %46 = math.tanh %45 : vector<8x32xf32>
    %47 = arith.mulf %42, %46 : vector<8x32xf32>
    %48 = vector.extract_strided_slice %2 {offsets = [16, 0], sizes = [8, 128], strides = [1, 1]} : vector<64x128xf32> to vector<8x128xf32>
    %cst_15 = arith.constant dense<0.000000e+00> : vector<8x128xf32>
    %49 = tpu.matmul %47, %3, %cst_15 {dimension_numbers = #tpu.dot_dimension_numbers<[1], [0], [0], [1], [0, 0, 1, 1], [], []>} : vector<8x32xf32>, vector<32x128xf32>, vector<8x128xf32> -> vector<8x128xf32>
    %50 = arith.addf %48, %49 : vector<8x128xf32>
    %51 = arith.negf %50 : vector<8x128xf32>
    %52 = math.exp %51 : vector<8x128xf32>
    %cst_16 = arith.constant 1.000000e+00 : f32
    %53 = vector.broadcast %cst_16 : f32 to vector<8x128xf32>
    %54 = arith.addf %53, %52 : vector<8x128xf32>
    %55 = arith.divf %53, %54 : vector<8x128xf32>
    %56 = vector.extract_strided_slice %55 {offsets = [0, 0], sizes = [8, 32], strides = [1, 1]} : vector<8x128xf32> to vector<8x32xf32>
    %57 = vector.extract_strided_slice %55 {offsets = [0, 32], sizes = [8, 32], strides = [1, 1]} : vector<8x128xf32> to vector<8x32xf32>
    %58 = vector.extract_strided_slice %55 {offsets = [0, 64], sizes = [8, 32], strides = [1, 1]} : vector<8x128xf32> to vector<8x32xf32>
    %cst_17 = arith.constant 2.000000e+00 : f32
    %59 = vector.broadcast %cst_17 : f32 to vector<8x32xf32>
    %60 = arith.mulf %59, %58 : vector<8x32xf32>
    %cst_18 = arith.constant 1.000000e+00 : f32
    %61 = vector.broadcast %cst_18 : f32 to vector<8x32xf32>
    %62 = arith.subf %60, %61 : vector<8x32xf32>
    %63 = vector.extract_strided_slice %55 {offsets = [0, 96], sizes = [8, 32], strides = [1, 1]} : vector<8x128xf32> to vector<8x32xf32>
    %64 = arith.mulf %57, %45 : vector<8x32xf32>
    %65 = arith.mulf %56, %62 : vector<8x32xf32>
    %66 = arith.addf %64, %65 : vector<8x32xf32>
    %67 = math.tanh %66 : vector<8x32xf32>
    %68 = arith.mulf %63, %67 : vector<8x32xf32>
    %69 = vector.extract_strided_slice %2 {offsets = [24, 0], sizes = [8, 128], strides = [1, 1]} : vector<64x128xf32> to vector<8x128xf32>
    %cst_19 = arith.constant dense<0.000000e+00> : vector<8x128xf32>
    %70 = tpu.matmul %68, %3, %cst_19 {dimension_numbers = #tpu.dot_dimension_numbers<[1], [0], [0], [1], [0, 0, 1, 1], [], []>} : vector<8x32xf32>, vector<32x128xf32>, vector<8x128xf32> -> vector<8x128xf32>
    %71 = arith.addf %69, %70 : vector<8x128xf32>
    %72 = arith.negf %71 : vector<8x128xf32>
    %73 = math.exp %72 : vector<8x128xf32>
    %cst_20 = arith.constant 1.000000e+00 : f32
    %74 = vector.broadcast %cst_20 : f32 to vector<8x128xf32>
    %75 = arith.addf %74, %73 : vector<8x128xf32>
    %76 = arith.divf %74, %75 : vector<8x128xf32>
    %77 = vector.extract_strided_slice %76 {offsets = [0, 0], sizes = [8, 32], strides = [1, 1]} : vector<8x128xf32> to vector<8x32xf32>
    %78 = vector.extract_strided_slice %76 {offsets = [0, 32], sizes = [8, 32], strides = [1, 1]} : vector<8x128xf32> to vector<8x32xf32>
    %79 = vector.extract_strided_slice %76 {offsets = [0, 64], sizes = [8, 32], strides = [1, 1]} : vector<8x128xf32> to vector<8x32xf32>
    %cst_21 = arith.constant 2.000000e+00 : f32
    %80 = vector.broadcast %cst_21 : f32 to vector<8x32xf32>
    %81 = arith.mulf %80, %79 : vector<8x32xf32>
    %cst_22 = arith.constant 1.000000e+00 : f32
    %82 = vector.broadcast %cst_22 : f32 to vector<8x32xf32>
    %83 = arith.subf %81, %82 : vector<8x32xf32>
    %84 = vector.extract_strided_slice %76 {offsets = [0, 96], sizes = [8, 32], strides = [1, 1]} : vector<8x128xf32> to vector<8x32xf32>
    %85 = arith.mulf %78, %66 : vector<8x32xf32>
    %86 = arith.mulf %77, %83 : vector<8x32xf32>
    %87 = arith.addf %85, %86 : vector<8x32xf32>
    %88 = math.tanh %87 : vector<8x32xf32>
    %89 = arith.mulf %84, %88 : vector<8x32xf32>
    %90 = vector.extract_strided_slice %2 {offsets = [32, 0], sizes = [8, 128], strides = [1, 1]} : vector<64x128xf32> to vector<8x128xf32>
    %cst_23 = arith.constant dense<0.000000e+00> : vector<8x128xf32>
    %91 = tpu.matmul %89, %3, %cst_23 {dimension_numbers = #tpu.dot_dimension_numbers<[1], [0], [0], [1], [0, 0, 1, 1], [], []>} : vector<8x32xf32>, vector<32x128xf32>, vector<8x128xf32> -> vector<8x128xf32>
    %92 = arith.addf %90, %91 : vector<8x128xf32>
    %93 = arith.negf %92 : vector<8x128xf32>
    %94 = math.exp %93 : vector<8x128xf32>
    %cst_24 = arith.constant 1.000000e+00 : f32
    %95 = vector.broadcast %cst_24 : f32 to vector<8x128xf32>
    %96 = arith.addf %95, %94 : vector<8x128xf32>
    %97 = arith.divf %95, %96 : vector<8x128xf32>
    %98 = vector.extract_strided_slice %97 {offsets = [0, 0], sizes = [8, 32], strides = [1, 1]} : vector<8x128xf32> to vector<8x32xf32>
    %99 = vector.extract_strided_slice %97 {offsets = [0, 32], sizes = [8, 32], strides = [1, 1]} : vector<8x128xf32> to vector<8x32xf32>
    %100 = vector.extract_strided_slice %97 {offsets = [0, 64], sizes = [8, 32], strides = [1, 1]} : vector<8x128xf32> to vector<8x32xf32>
    %cst_25 = arith.constant 2.000000e+00 : f32
    %101 = vector.broadcast %cst_25 : f32 to vector<8x32xf32>
    %102 = arith.mulf %101, %100 : vector<8x32xf32>
    %cst_26 = arith.constant 1.000000e+00 : f32
    %103 = vector.broadcast %cst_26 : f32 to vector<8x32xf32>
    %104 = arith.subf %102, %103 : vector<8x32xf32>
    %105 = vector.extract_strided_slice %97 {offsets = [0, 96], sizes = [8, 32], strides = [1, 1]} : vector<8x128xf32> to vector<8x32xf32>
    %106 = arith.mulf %99, %87 : vector<8x32xf32>
    %107 = arith.mulf %98, %104 : vector<8x32xf32>
    %108 = arith.addf %106, %107 : vector<8x32xf32>
    %109 = math.tanh %108 : vector<8x32xf32>
    %110 = arith.mulf %105, %109 : vector<8x32xf32>
    %111 = vector.extract_strided_slice %2 {offsets = [40, 0], sizes = [8, 128], strides = [1, 1]} : vector<64x128xf32> to vector<8x128xf32>
    %cst_27 = arith.constant dense<0.000000e+00> : vector<8x128xf32>
    %112 = tpu.matmul %110, %3, %cst_27 {dimension_numbers = #tpu.dot_dimension_numbers<[1], [0], [0], [1], [0, 0, 1, 1], [], []>} : vector<8x32xf32>, vector<32x128xf32>, vector<8x128xf32> -> vector<8x128xf32>
    %113 = arith.addf %111, %112 : vector<8x128xf32>
    %114 = arith.negf %113 : vector<8x128xf32>
    %115 = math.exp %114 : vector<8x128xf32>
    %cst_28 = arith.constant 1.000000e+00 : f32
    %116 = vector.broadcast %cst_28 : f32 to vector<8x128xf32>
    %117 = arith.addf %116, %115 : vector<8x128xf32>
    %118 = arith.divf %116, %117 : vector<8x128xf32>
    %119 = vector.extract_strided_slice %118 {offsets = [0, 0], sizes = [8, 32], strides = [1, 1]} : vector<8x128xf32> to vector<8x32xf32>
    %120 = vector.extract_strided_slice %118 {offsets = [0, 32], sizes = [8, 32], strides = [1, 1]} : vector<8x128xf32> to vector<8x32xf32>
    %121 = vector.extract_strided_slice %118 {offsets = [0, 64], sizes = [8, 32], strides = [1, 1]} : vector<8x128xf32> to vector<8x32xf32>
    %cst_29 = arith.constant 2.000000e+00 : f32
    %122 = vector.broadcast %cst_29 : f32 to vector<8x32xf32>
    %123 = arith.mulf %122, %121 : vector<8x32xf32>
    %cst_30 = arith.constant 1.000000e+00 : f32
    %124 = vector.broadcast %cst_30 : f32 to vector<8x32xf32>
    %125 = arith.subf %123, %124 : vector<8x32xf32>
    %126 = vector.extract_strided_slice %118 {offsets = [0, 96], sizes = [8, 32], strides = [1, 1]} : vector<8x128xf32> to vector<8x32xf32>
    %127 = arith.mulf %120, %108 : vector<8x32xf32>
    %128 = arith.mulf %119, %125 : vector<8x32xf32>
    %129 = arith.addf %127, %128 : vector<8x32xf32>
    %130 = math.tanh %129 : vector<8x32xf32>
    %131 = arith.mulf %126, %130 : vector<8x32xf32>
    %132 = vector.extract_strided_slice %2 {offsets = [48, 0], sizes = [8, 128], strides = [1, 1]} : vector<64x128xf32> to vector<8x128xf32>
    %cst_31 = arith.constant dense<0.000000e+00> : vector<8x128xf32>
    %133 = tpu.matmul %131, %3, %cst_31 {dimension_numbers = #tpu.dot_dimension_numbers<[1], [0], [0], [1], [0, 0, 1, 1], [], []>} : vector<8x32xf32>, vector<32x128xf32>, vector<8x128xf32> -> vector<8x128xf32>
    %134 = arith.addf %132, %133 : vector<8x128xf32>
    %135 = arith.negf %134 : vector<8x128xf32>
    %136 = math.exp %135 : vector<8x128xf32>
    %cst_32 = arith.constant 1.000000e+00 : f32
    %137 = vector.broadcast %cst_32 : f32 to vector<8x128xf32>
    %138 = arith.addf %137, %136 : vector<8x128xf32>
    %139 = arith.divf %137, %138 : vector<8x128xf32>
    %140 = vector.extract_strided_slice %139 {offsets = [0, 0], sizes = [8, 32], strides = [1, 1]} : vector<8x128xf32> to vector<8x32xf32>
    %141 = vector.extract_strided_slice %139 {offsets = [0, 32], sizes = [8, 32], strides = [1, 1]} : vector<8x128xf32> to vector<8x32xf32>
    %142 = vector.extract_strided_slice %139 {offsets = [0, 64], sizes = [8, 32], strides = [1, 1]} : vector<8x128xf32> to vector<8x32xf32>
    %cst_33 = arith.constant 2.000000e+00 : f32
    %143 = vector.broadcast %cst_33 : f32 to vector<8x32xf32>
    %144 = arith.mulf %143, %142 : vector<8x32xf32>
    %cst_34 = arith.constant 1.000000e+00 : f32
    %145 = vector.broadcast %cst_34 : f32 to vector<8x32xf32>
    %146 = arith.subf %144, %145 : vector<8x32xf32>
    %147 = vector.extract_strided_slice %139 {offsets = [0, 96], sizes = [8, 32], strides = [1, 1]} : vector<8x128xf32> to vector<8x32xf32>
    %148 = arith.mulf %141, %129 : vector<8x32xf32>
    %149 = arith.mulf %140, %146 : vector<8x32xf32>
    %150 = arith.addf %148, %149 : vector<8x32xf32>
    %151 = math.tanh %150 : vector<8x32xf32>
    %152 = arith.mulf %147, %151 : vector<8x32xf32>
    %153 = vector.extract_strided_slice %2 {offsets = [56, 0], sizes = [8, 128], strides = [1, 1]} : vector<64x128xf32> to vector<8x128xf32>
    %cst_35 = arith.constant dense<0.000000e+00> : vector<8x128xf32>
    %154 = tpu.matmul %152, %3, %cst_35 {dimension_numbers = #tpu.dot_dimension_numbers<[1], [0], [0], [1], [0, 0, 1, 1], [], []>} : vector<8x32xf32>, vector<32x128xf32>, vector<8x128xf32> -> vector<8x128xf32>
    %155 = arith.addf %153, %154 : vector<8x128xf32>
    %156 = arith.negf %155 : vector<8x128xf32>
    %157 = math.exp %156 : vector<8x128xf32>
    %cst_36 = arith.constant 1.000000e+00 : f32
    %158 = vector.broadcast %cst_36 : f32 to vector<8x128xf32>
    %159 = arith.addf %158, %157 : vector<8x128xf32>
    %160 = arith.divf %158, %159 : vector<8x128xf32>
    %161 = vector.extract_strided_slice %160 {offsets = [0, 0], sizes = [8, 32], strides = [1, 1]} : vector<8x128xf32> to vector<8x32xf32>
    %162 = vector.extract_strided_slice %160 {offsets = [0, 32], sizes = [8, 32], strides = [1, 1]} : vector<8x128xf32> to vector<8x32xf32>
    %163 = vector.extract_strided_slice %160 {offsets = [0, 64], sizes = [8, 32], strides = [1, 1]} : vector<8x128xf32> to vector<8x32xf32>
    %cst_37 = arith.constant 2.000000e+00 : f32
    %164 = vector.broadcast %cst_37 : f32 to vector<8x32xf32>
    %165 = arith.mulf %164, %163 : vector<8x32xf32>
    %cst_38 = arith.constant 1.000000e+00 : f32
    %166 = vector.broadcast %cst_38 : f32 to vector<8x32xf32>
    %167 = arith.subf %165, %166 : vector<8x32xf32>
    %168 = vector.extract_strided_slice %160 {offsets = [0, 96], sizes = [8, 32], strides = [1, 1]} : vector<8x128xf32> to vector<8x32xf32>
    %169 = arith.mulf %162, %150 : vector<8x32xf32>
    %170 = arith.mulf %161, %167 : vector<8x32xf32>
    %171 = arith.addf %169, %170 : vector<8x32xf32>
    %172 = math.tanh %171 : vector<8x32xf32>
    %173 = arith.mulf %168, %172 : vector<8x32xf32>
    %174 = arith.mulf %26, %173 : vector<8x32xf32>
    %cst_39 = arith.constant dense<0.000000e+00> : vector<8xf32>
    %175 = vector.multi_reduction <add>, %174, %cst_39 [1] : vector<8x32xf32> to vector<8xf32>
    %176 = vector.shape_cast %175 : vector<8xf32> to vector<8x1xf32>
    %177 = arith.mulf %47, %173 : vector<8x32xf32>
    %cst_40 = arith.constant dense<0.000000e+00> : vector<8xf32>
    %178 = vector.multi_reduction <add>, %177, %cst_40 [1] : vector<8x32xf32> to vector<8xf32>
    %179 = vector.shape_cast %178 : vector<8xf32> to vector<8x1xf32>
    %180 = arith.mulf %68, %173 : vector<8x32xf32>
    %cst_41 = arith.constant dense<0.000000e+00> : vector<8xf32>
    %181 = vector.multi_reduction <add>, %180, %cst_41 [1] : vector<8x32xf32> to vector<8xf32>
    %182 = vector.shape_cast %181 : vector<8xf32> to vector<8x1xf32>
    %183 = arith.mulf %89, %173 : vector<8x32xf32>
    %cst_42 = arith.constant dense<0.000000e+00> : vector<8xf32>
    %184 = vector.multi_reduction <add>, %183, %cst_42 [1] : vector<8x32xf32> to vector<8xf32>
    %185 = vector.shape_cast %184 : vector<8xf32> to vector<8x1xf32>
    %186 = arith.mulf %110, %173 : vector<8x32xf32>
    %cst_43 = arith.constant dense<0.000000e+00> : vector<8xf32>
    %187 = vector.multi_reduction <add>, %186, %cst_43 [1] : vector<8x32xf32> to vector<8xf32>
    %188 = vector.shape_cast %187 : vector<8xf32> to vector<8x1xf32>
    %189 = arith.mulf %131, %173 : vector<8x32xf32>
    %cst_44 = arith.constant dense<0.000000e+00> : vector<8xf32>
    %190 = vector.multi_reduction <add>, %189, %cst_44 [1] : vector<8x32xf32> to vector<8xf32>
    %191 = vector.shape_cast %190 : vector<8xf32> to vector<8x1xf32>
    %192 = arith.mulf %152, %173 : vector<8x32xf32>
    %cst_45 = arith.constant dense<0.000000e+00> : vector<8xf32>
    %193 = vector.multi_reduction <add>, %192, %cst_45 [1] : vector<8x32xf32> to vector<8xf32>
    %194 = vector.shape_cast %193 : vector<8xf32> to vector<8x1xf32>
    %195 = arith.mulf %173, %173 : vector<8x32xf32>
    %cst_46 = arith.constant dense<0.000000e+00> : vector<8xf32>
    %196 = vector.multi_reduction <add>, %195, %cst_46 [1] : vector<8x32xf32> to vector<8xf32>
    %197 = vector.shape_cast %196 : vector<8xf32> to vector<8x1xf32>
    %198 = arith.maximumf %176, %179 : vector<8x1xf32>
    %199 = arith.maximumf %198, %182 : vector<8x1xf32>
    %200 = arith.maximumf %199, %185 : vector<8x1xf32>
    %201 = arith.maximumf %200, %188 : vector<8x1xf32>
    %202 = arith.maximumf %201, %191 : vector<8x1xf32>
    %203 = arith.maximumf %202, %194 : vector<8x1xf32>
    %204 = arith.maximumf %203, %197 : vector<8x1xf32>
    %205 = arith.subf %176, %204 : vector<8x1xf32>
    %206 = math.exp %205 : vector<8x1xf32>
    %207 = arith.subf %179, %204 : vector<8x1xf32>
    %208 = math.exp %207 : vector<8x1xf32>
    %209 = arith.subf %182, %204 : vector<8x1xf32>
    %210 = math.exp %209 : vector<8x1xf32>
    %211 = arith.subf %185, %204 : vector<8x1xf32>
    %212 = math.exp %211 : vector<8x1xf32>
    %213 = arith.subf %188, %204 : vector<8x1xf32>
    %214 = math.exp %213 : vector<8x1xf32>
    %215 = arith.subf %191, %204 : vector<8x1xf32>
    %216 = math.exp %215 : vector<8x1xf32>
    %217 = arith.subf %194, %204 : vector<8x1xf32>
    %218 = math.exp %217 : vector<8x1xf32>
    %219 = arith.subf %197, %204 : vector<8x1xf32>
    %220 = math.exp %219 : vector<8x1xf32>
    %221 = arith.addf %206, %208 : vector<8x1xf32>
    %222 = arith.addf %221, %210 : vector<8x1xf32>
    %223 = arith.addf %222, %212 : vector<8x1xf32>
    %224 = arith.addf %223, %214 : vector<8x1xf32>
    %225 = arith.addf %224, %216 : vector<8x1xf32>
    %226 = arith.addf %225, %218 : vector<8x1xf32>
    %227 = arith.addf %226, %220 : vector<8x1xf32>
    %cst_47 = arith.constant 1.000000e+00 : f32
    %228 = vector.broadcast %cst_47 : f32 to vector<8x1xf32>
    %229 = arith.divf %228, %227 : vector<8x1xf32>
    %cst_48 = arith.constant 0.000000e+00 : f32
    %230 = vector.broadcast %cst_48 : f32 to vector<8x32xf32>
    %231 = arith.mulf %206, %229 : vector<8x1xf32>
    %232 = vector.broadcast %231 : vector<8x1xf32> to vector<8x32xf32>
    %233 = arith.mulf %232, %26 : vector<8x32xf32>
    %234 = arith.addf %230, %233 : vector<8x32xf32>
    %235 = arith.mulf %208, %229 : vector<8x1xf32>
    %236 = vector.broadcast %235 : vector<8x1xf32> to vector<8x32xf32>
    %237 = arith.mulf %236, %47 : vector<8x32xf32>
    %238 = arith.addf %234, %237 : vector<8x32xf32>
    %239 = arith.mulf %210, %229 : vector<8x1xf32>
    %240 = vector.broadcast %239 : vector<8x1xf32> to vector<8x32xf32>
    %241 = arith.mulf %240, %68 : vector<8x32xf32>
    %242 = arith.addf %238, %241 : vector<8x32xf32>
    %243 = arith.mulf %212, %229 : vector<8x1xf32>
    %244 = vector.broadcast %243 : vector<8x1xf32> to vector<8x32xf32>
    %245 = arith.mulf %244, %89 : vector<8x32xf32>
    %246 = arith.addf %242, %245 : vector<8x32xf32>
    %247 = arith.mulf %214, %229 : vector<8x1xf32>
    %248 = vector.broadcast %247 : vector<8x1xf32> to vector<8x32xf32>
    %249 = arith.mulf %248, %110 : vector<8x32xf32>
    %250 = arith.addf %246, %249 : vector<8x32xf32>
    %251 = arith.mulf %216, %229 : vector<8x1xf32>
    %252 = vector.broadcast %251 : vector<8x1xf32> to vector<8x32xf32>
    %253 = arith.mulf %252, %131 : vector<8x32xf32>
    %254 = arith.addf %250, %253 : vector<8x32xf32>
    %255 = arith.mulf %218, %229 : vector<8x1xf32>
    %256 = vector.broadcast %255 : vector<8x1xf32> to vector<8x32xf32>
    %257 = arith.mulf %256, %152 : vector<8x32xf32>
    %258 = arith.addf %254, %257 : vector<8x32xf32>
    %259 = arith.mulf %220, %229 : vector<8x1xf32>
    %260 = vector.broadcast %259 : vector<8x1xf32> to vector<8x32xf32>
    %261 = arith.mulf %260, %173 : vector<8x32xf32>
    %262 = arith.addf %258, %261 : vector<8x32xf32>
    %c0_49 = arith.constant 0 : index
    %c0_50 = arith.constant 0 : index
    %263 = vector.load %arg3[%c0_49, %c0_50] : memref<1x32xf32, #tpu.memory_space<vmem>>, vector<1x32xf32>
    %264 = vector.broadcast %263 : vector<1x32xf32> to vector<8x32xf32>
    %265 = arith.mulf %262, %264 : vector<8x32xf32>
    %c0_51 = arith.constant 0 : index
    %c0_52 = arith.constant 0 : index
    %266 = vector.load %arg4[%c0_51, %c0_52] : memref<1x32xf32, #tpu.memory_space<vmem>>, vector<1x32xf32>
    %267 = vector.broadcast %266 : vector<1x32xf32> to vector<8x32xf32>
    %268 = arith.mulf %173, %267 : vector<8x32xf32>
    %269 = arith.addf %265, %268 : vector<8x32xf32>
    %cst_53 = arith.constant dense<0.000000e+00> : vector<8xf32>
    %270 = vector.multi_reduction <add>, %269, %cst_53 [1] : vector<8x32xf32> to vector<8xf32>
    %271 = vector.shape_cast %270 : vector<8xf32> to vector<8x1xf32>
    %c0_54 = arith.constant 0 : index
    %c0_55 = arith.constant 0 : index
    %272 = vector.load %arg5[%c0_54, %c0_55] : memref<1x1xf32, #tpu.memory_space<vmem>>, vector<1x1xf32>
    %273 = vector.broadcast %272 : vector<1x1xf32> to vector<8x1xf32>
    %274 = arith.addf %271, %273 : vector<8x1xf32>
    %c0_56 = arith.constant 0 : index
    %c0_57 = arith.constant 0 : index
    %275 = vector.load %arg6[%c0_56, %c0_57] : memref<8x1xf32, #tpu.memory_space<vmem>>, vector<8x1xf32>
    tpu.vector_store %arg6[%c0_56, %c0_57], %274 {strides = array<i32>} : memref<8x1xf32, #tpu.memory_space<vmem>>, vector<8x1xf32>,
    return
  }
}

</mosaic_0001>

<bundles_post_ra>
// kernel: lstm_attn_forward.1
= control target key start
LH: loop header
LB: loop body
LE: loop exit
PB: predicated region body
PF: predicated region fallthrough
CT: control target
= control target key end

     0   :  { %vm34_vm0 = vcmask 64512   ;;  %v1450_v0 = vmov 0.0|0.0   ;;  %vm1451_vm1 = vmmov 0   ;;  %v1452_v4 = vmov 0.0   ;;  %s1454_s10 = smov 32   ;;  %s1455_s24 = smov 96   ;;  %s1719_s2 = inlined_call_operand.vmem [shape: f32[32,128], index: 2, kind: input, shape index: {}]   ;;  %s1720_s1 = inlined_call_operand.vmem [shape: f32[8,128], index: 1, kind: input, shape index: {}]   ;;  %s1721_s0 = inlined_call_operand.vmem [shape: f32[64,8], index: 0, kind: input, shape index: {}]   ;;  %s1722_s4 = inlined_call_operand.vmem [shape: f32[1,32], index: 4, kind: input, shape index: {}]   ;;  %s1723_s3 = inlined_call_operand.vmem [shape: f32[1,32], index: 3, kind: input, shape index: {}]   ;;  %s1724_s5 = inlined_call_operand.<no memory space> [shape: f32[1,1], index: 5, kind: input, shape index: {}]   ;;  %s1725_s6 = inlined_call_operand.vmem [shape: f32[8,1], index: 6, kind: output, shape index: {}]  }
   0x1   :  { %1330 = vmatprep.subr.bf16.mxu1 %v1450_v0  ;;  %v164_v1 = vld [vmem:[%s1719_s2] sm:$0xff]  ;;  %v165_v2 = vld [vmem:[%s1719_s2 + $0x8] sm:$0xff]  ;;  %1250 = vmatprep.mubr.msk.f32.mxu1 %vm1451_vm1, %v1452_v4  ;;  %v166_v7 = vld [vmem:[%s1719_s2 + $0x10] sm:$0xff]  ;;  %vm168_vm2 = vcmask 261120   ;;  %vm1139_vm3 = vcmask 7168  }
   0x2   :  { %v33_v3 = vld [vmem:[%s1720_s1] sm:$0xff]  ;;  %v1503_v5 = vpack.c.bf16 %v165_v2, %v164_v1  ;;  %v167_v8 = vld [vmem:[%s1719_s2 + $0x18] sm:$0xff]  ;;  %v26_v9 = vld [vmem:[%s1721_s0 + $0x8] sm:$0xff]  ;;  %s1453_s2 = smov 64  }
   0x3   :  { %1228 = vmatprep.subr.mxu0 %v33_v3  ;;  %v25_v6 = vld [vmem:[%s1721_s0] sm:$0xff]  ;;  %v1519_v10 = vpack.c.bf16 %v167_v8, %v166_v7  ;;  %v27_v45 = vld [vmem:[%s1721_s0 + $0x10] sm:$0xff]  ;;  %v28_v46 = vld [vmem:[%s1721_s0 + $0x18] sm:$0xff] }
   0x4   :  { %1229 = vmatpush3.msra.mxu0 %v33_v3  ;;  %1230 = vmatprep.mubr.msk.f32.mxu0 %vm34_vm0, %v25_v6  ;;  %v29_v47 = vld [vmem:[%s1721_s0 + $0x20] sm:$0xff]  ;;  %v30_v48 = vld [vmem:[%s1721_s0 + $0x28] sm:$0xff]  ;;  %v31_v49 = vld [vmem:[%s1721_s0 + $0x30] sm:$0xff] }
   0x5   :  { %1332 = vmatpush3.bf16.msra.mxu1 %v1503_v5  ;;  %1231 = vmatmul.mubr.msk.f32.vlgmr.msra.gmra.mrb[0].mxu0 %vm34_vm0, %v26_v9  ;;  %v32_v50 = vld [vmem:[%s1721_s0 + $0x38] sm:$0xff] }
   0x6   :  { %1333 = vmatprep.subr.bf16.mxu1 %v1450_v0  ;;  %1342 = vmatprep.subr.bf16.mxu0 %v1450_v0 }
   0x7   :  { %1344 = vmatpush3.bf16.msra.mxu0 %v1503_v5  ;;  %1233 = vmatprep.mubr.msk.f32.mxu0 %vm34_vm0, %v27_v45 }
   0x8   :  { %1345 = vmatprep.subr.bf16.mxu0 %v1450_v0 }
   0x9   :  { %1335 = vmatpush3.bf16.msra.mxu1 %v1519_v10  ;;  %1234 = vmatmul.mubr.msk.f32.gmra.mrb[2].mxu0 %vm34_vm0, %v28_v46 }
   0xa   :  { %1336 = vmatprep.subr.bf16.mxu1 %v1450_v0  ;;  %1236 = vmatprep.mubr.msk.f32.mxu0 %vm34_vm0, %v29_v47 }
   0xb   :  { %1347 = vmatpush3.bf16.msra.mxu0 %v1519_v10 }
   0xc   :  { %1251 = vmatmul.mubr.f32.vlgmr.msra.gmra.mrb[0].mxu1 %v1452_v4  ;;  %1354 = vmatprep.subr.bf16.mxu0 %v1450_v0 }
   0xd   :  { %1338 = vmatpush3.bf16.msra.mxu1 %v1503_v5  ;;  %1261 = vmatprep.mubr.msk.f32.mxu1 %vm1451_vm1, %v1452_v4 }
   0xe   :  { %1339 = vmatprep.subr.bf16.mxu1 %v1450_v0  ;;  %1237 = vmatmul.mubr.msk.f32.gmra.mrb[4].mxu0 %vm34_vm0, %v30_v48 }
   0xf   :  { %1239 = vmatprep.mubr.msk.f32.mxu0 %vm34_vm0, %v31_v49 }
  0x11   :  { %1341 = vmatpush3.bf16.msra.mxu1 %v1519_v10 }
  0x12   :  { %1348 = vmatprep.subr.bf16.mxu1 %v1450_v0  ;;  %1240 = vmatmul.mubr.msk.f32.gmra.mrb[6].mxu0 %vm34_vm0, %v32_v50 }
  0x13   :  { %1272 = vmatprep.mubr.msk.f32.mxu0 %vm1451_vm1, %v1452_v4 }
  0xd8   :  { %v1232_v11 = vpop.f32.mrb[0].mxu0 }
  0xd9   :  { %v125_v12 = vpop.f32.mrb[1].mxu0 }
  0xdc   :  { %v1235_v54 = vpop.f32.mrb[2].mxu0 }
  0xdd   :  { %v135_v55 = vpop.f32.mrb[3].mxu0 }
  0xdf   :  { %v238_v13 = vpop.f32.mrb[0].mxu1 }
  0xe0   :  { %v242_v14 = vadd.f32 %v238_v13, %v125_v12  ;;  %v1252_v15 = vpop.f32.mrb[1].mxu1 }
  0xe1   :  { %v1584_v56 = vpop.f32.mrb[4].mxu0 }
  0xe2   :  { %v1153_v16 = vmul.f32 -1.442695, %v242_v14  ;;  %v1586_v57 = vpop.f32.mrb[5].mxu0 }
  0xe4   :  { %1384 = vpow2.f32 %v1153_v16 }
  0xe5   :  { %v1588_v58 = vpop.f32.mrb[6].mxu0 }
  0xe6   :  { %v1590_v59 = vpop.f32.mrb[7].mxu0 }
  0xee   :  { %v1385_v17 = vpop.eup %1384 }
  0xef   :  { %v246_v18 = vadd.f32 1.0, %v1385_v17 }
  0xf1   :  { %1386 = vrcp.f32 %v246_v18 }
  0xfb   :  { %v1387_v19 = vpop.eup %1386 }
  0xfc   :  { %v249_v20 = vmul.f32 2.0, %v1387_v19  ;;  %v251_v24 = vmul.f32 0.0, %v1387_v19 }
  0xfe   :  { %v1154_v21 = vadd.f32 -1.0, %v249_v20 }
 0x100   :  { %253 = vrot.lane.b32.xlu0 %v1154_v21, %s1453_s2 }
 0x172   :  { %v254_v22 = vpop.permute.xlu0 %253 }
 0x173   :  { %v256_v23 = vmul.f32 %v1387_v19, %v254_v22 }
 0x175   :  { %258 = vrot.lane.b32.xlu0 %v256_v23, %s1454_s10 }
 0x1e7   :  { %v259_v25 = vpop.permute.xlu0 %258 }
 0x1e8   :  { %v261_v26 = vadd.f32 %v259_v25, %v251_v24 }
 0x1ea   :  { %1388 = vtanh.f32 %v261_v26 }
 0x1f4   :  { %v1389_v27 = vpop.eup %1388 }
 0x1f5   :  { %264 = vrot.lane.b32.xlu1 %v1389_v27, %s1453_s2 }
 0x267   :  { %v265_v28 = vpop.permute.xlu1 %264 }
 0x268   :  { %v1540_v29 = vmul.f32 %v1387_v19, %v265_v28 }
 0x26a   :  { %269 = vrot.lane.b32.xlu1 %v1540_v29, %s1454_s10 }
 0x2dc   :  { %v270_v30 = vpop.permute.xlu1 %269 }
 0x2dd   :  { %1262 = vmatmul.mubr.msk.f32.vlgmr.msra.gmra.mrb[2].mxu1 %vm168_vm2, %v270_v30 }
 0x2de   :  { %1350 = vmatpush3.bf16.msra.mxu1 %v1503_v5  ;;  %1283 = vmatprep.mubr.msk.f32.mxu1 %vm1451_vm1, %v1452_v4 }
 0x2df   :  { %1351 = vmatprep.subr.bf16.mxu1 %v1450_v0 }
 0x2e2   :  { %1353 = vmatpush3.bf16.msra.mxu1 %v1519_v10 }
 0x2e3   :  { %1360 = vmatprep.subr.bf16.mxu1 %v1450_v0 }
 0x3b0   :  { %v339_v31 = vpop.f32.mrb[2].mxu1 }
 0x3b1   :  { %v343_v32 = vadd.f32 %v1232_v11, %v339_v31  ;;  %v1263_v33 = vpop.f32.mrb[3].mxu1 }
 0x3b3   :  { %v1156_v34 = vmul.f32 -1.442695, %v343_v32 }
 0x3b5   :  { %1390 = vpow2.f32 %v1156_v34 }
 0x3bf   :  { %v1391_v35 = vpop.eup %1390 }
 0x3c0   :  { %v347_v36 = vadd.f32 1.0, %v1391_v35 }
 0x3c2   :  { %1392 = vrcp.f32 %v347_v36 }
 0x3cc   :  { %v1393_v37 = vpop.eup %1392 }
 0x3cd   :  { %v350_v38 = vmul.f32 2.0, %v1393_v37  ;;  %v352_v42 = vmul.f32 %v1393_v37, %v261_v26 }
 0x3cf   :  { %v1157_v39 = vadd.f32 -1.0, %v350_v38 }
 0x3d1   :  { %354 = vrot.lane.b32.xlu0 %v1157_v39, %s1453_s2 }
 0x443   :  { %v355_v40 = vpop.permute.xlu0 %354 }
 0x444   :  { %v357_v41 = vmul.f32 %v1393_v37, %v355_v40 }
 0x446   :  { %359 = vrot.lane.b32.xlu1 %v357_v41, %s1454_s10 }
 0x4b8   :  { %v360_v43 = vpop.permute.xlu1 %359 }
 0x4b9   :  { %v362_v44 = vadd.f32 %v360_v43, %v352_v42 }
 0x4bb   :  { %1394 = vtanh.f32 %v362_v44 }
 0x4c5   :  { %v1395_v51 = vpop.eup %1394 }
 0x4c6   :  { %365 = vrot.lane.b32.xlu0 %v1395_v51, %s1453_s2 }
 0x538   :  { %v366_v52 = vpop.permute.xlu0 %365 }
 0x539   :  { %v1580_v53 = vmul.f32 %v1393_v37, %v366_v52 }
 0x53b   :  { %370 = vrot.lane.b32.xlu1 %v1580_v53, %s1454_s10 }
 0x5ad   :  { %v371_v60 = vpop.permute.xlu1 %370 }
 0x5ae   :  { %1273 = vmatmul.mubr.msk.f32.vlgmr.msra.gmra.mrb[8].mxu0 %vm168_vm2, %v371_v60 }
 0x5af   :  { %1356 = vmatpush3.bf16.msra.mxu0 %v1503_v5  ;;  %1294 = vmatprep.mubr.msk.f32.mxu0 %vm1451_vm1, %v1452_v4 }
 0x5b0   :  { %1357 = vmatprep.subr.bf16.mxu0 %v1450_v0 }
 0x5b3   :  { %1359 = vmatpush3.bf16.msra.mxu0 %v1519_v10 }
 0x5b4   :  { %1366 = vmatprep.subr.bf16.mxu0 %v1450_v0 }
 0x681   :  { %v440_v61 = vpop.f32.mrb[8].mxu0 }
 0x682   :  { %v444_v62 = vadd.f32 %v440_v61, %v135_v55  ;;  %v1274_v63 = vpop.f32.mrb[9].mxu0 }
 0x684   :  { %v1159_v1 = vmul.f32 -1.442695, %v444_v62 }
 0x686   :  { %1396 = vpow2.f32 %v1159_v1 }
 0x690   :  { %v1397_v2 = vpop.eup %1396 }
 0x691   :  { %v448_v3 = vadd.f32 1.0, %v1397_v2 }
 0x693   :  { %1398 = vrcp.f32 %v448_v3 }
 0x69d   :  { %v1399_v6 = vpop.eup %1398 }
 0x69e   :  { %v451_v7 = vmul.f32 2.0, %v1399_v6  ;;  %v453_v12 = vmul.f32 %v1399_v6, %v362_v44 }
 0x6a0   :  { %v1160_v8 = vadd.f32 -1.0, %v451_v7 }
 0x6a2   :  { %455 = vrot.lane.b32.xlu0 %v1160_v8, %s1453_s2 }
 0x714   :  { %v456_v9 = vpop.permute.xlu0 %455 }
 0x715   :  { %v458_v11 = vmul.f32 %v1399_v6, %v456_v9 }
 0x717   :  { %460 = vrot.lane.b32.xlu1 %v458_v11, %s1454_s10 }
 0x789   :  { %v461_v13 = vpop.permute.xlu1 %460 }
 0x78a   :  { %v463_v14 = vadd.f32 %v461_v13, %v453_v12 }
 0x78c   :  { %1400 = vtanh.f32 %v463_v14 }
 0x796   :  { %v1401_v15 = vpop.eup %1400 }
 0x797   :  { %466 = vrot.lane.b32.xlu0 %v1401_v15, %s1453_s2 }
 0x809   :  { %v467_v16 = vpop.permute.xlu0 %466 }
 0x80a   :  { %v1602_v17 = vmul.f32 %v1399_v6, %v467_v16 }
 0x80c   :  { %471 = vrot.lane.b32.xlu1 %v1602_v17, %s1454_s10 }
 0x87e   :  { %v472_v18 = vpop.permute.xlu1 %471 }
 0x87f   :  { %1284 = vmatmul.mubr.msk.f32.vlgmr.msra.gmra.mrb[4].mxu1 %vm168_vm2, %v472_v18 }
 0x880   :  { %1362 = vmatpush3.bf16.msra.mxu1 %v1503_v5  ;;  %1305 = vmatprep.mubr.msk.f32.mxu1 %vm1451_vm1, %v1452_v4 }
 0x881   :  { %1363 = vmatprep.subr.bf16.mxu1 %v1450_v0 }
 0x884   :  { %1365 = vmatpush3.bf16.msra.mxu1 %v1519_v10 }
 0x885   :  { %1372 = vmatprep.subr.bf16.mxu1 %v1450_v0 }
 0x952   :  { %v541_v19 = vpop.f32.mrb[4].mxu1 }
 0x953   :  { %v545_v20 = vadd.f32 %v1235_v54, %v541_v19  ;;  %v1285_v21 = vpop.f32.mrb[5].mxu1 }
 0x955   :  { %v1162_v22 = vmul.f32 -1.442695, %v545_v20 }
 0x957   :  { %1402 = vpow2.f32 %v1162_v22 }
 0x961   :  { %v1403_v23 = vpop.eup %1402 }
 0x962   :  { %v549_v24 = vadd.f32 1.0, %v1403_v23 }
 0x964   :  { %1404 = vrcp.f32 %v549_v24 }
 0x96e   :  { %v1405_v25 = vpop.eup %1404 }
 0x96f   :  { %v552_v26 = vmul.f32 2.0, %v1405_v25  ;;  %v554_v31 = vmul.f32 %v1405_v25, %v463_v14 }
 0x971   :  { %v1163_v27 = vadd.f32 -1.0, %v552_v26 }
 0x973   :  { %556 = vrot.lane.b32.xlu0 %v1163_v27, %s1453_s2 }
 0x9e5   :  { %v557_v28 = vpop.permute.xlu0 %556 }
 0x9e6   :  { %v559_v30 = vmul.f32 %v1405_v25, %v557_v28 }
 0x9e8   :  { %561 = vrot.lane.b32.xlu1 %v559_v30, %s1454_s10 }
 0xa5a   :  { %v562_v32 = vpop.permute.xlu1 %561 }
 0xa5b   :  { %v564_v33 = vadd.f32 %v562_v32, %v554_v31 }
 0xa5d   :  { %1406 = vtanh.f32 %v564_v33 }
 0xa67   :  { %v1407_v34 = vpop.eup %1406 }
 0xa68   :  { %567 = vrot.lane.b32.xlu0 %v1407_v34, %s1453_s2 }
 0xada   :  { %v568_v35 = vpop.permute.xlu0 %567 }
 0xadb   :  { %v1616_v36 = vmul.f32 %v1405_v25, %v568_v35 }
 0xadd   :  { %572 = vrot.lane.b32.xlu1 %v1616_v36, %s1454_s10 }
 0xb4f   :  { %v573_v37 = vpop.permute.xlu1 %572 }
 0xb50   :  { %1295 = vmatmul.mubr.msk.f32.vlgmr.msra.gmra.mrb[10].mxu0 %vm168_vm2, %v573_v37 }
 0xb51   :  { %1368 = vmatpush3.bf16.msra.mxu0 %v1503_v5  ;;  %1316 = vmatprep.mubr.msk.f32.mxu0 %vm1451_vm1, %v1452_v4 }
 0xb52   :  { %1369 = vmatprep.subr.bf16.mxu0 %v1450_v0 }
 0xb55   :  { %1371 = vmatpush3.bf16.msra.mxu0 %v1519_v10 }
 0xc23   :  { %v642_v38 = vpop.f32.mrb[10].mxu0 }
 0xc24   :  { %v646_v39 = vadd.f32 %v642_v38, %v1586_v57  ;;  %v1296_v40 = vpop.f32.mrb[11].mxu0 }
 0xc26   :  { %v1165_v41 = vmul.f32 -1.442695, %v646_v39 }
 0xc28   :  { %1408 = vpow2.f32 %v1165_v41 }
 0xc32   :  { %v1409_v42 = vpop.eup %1408 }
 0xc33   :  { %v650_v43 = vadd.f32 1.0, %v1409_v42 }
 0xc35   :  { %1410 = vrcp.f32 %v650_v43 }
 0xc3f   :  { %v1411_v44 = vpop.eup %1410 }
 0xc40   :  { %v653_v45 = vmul.f32 2.0, %v1411_v44  ;;  %v655_v49 = vmul.f32 %v1411_v44, %v564_v33 }
 0xc42   :  { %v1166_v46 = vadd.f32 -1.0, %v653_v45 }
 0xc44   :  { %657 = vrot.lane.b32.xlu0 %v1166_v46, %s1453_s2 }
 0xcb6   :  { %v658_v47 = vpop.permute.xlu0 %657 }
 0xcb7   :  { %v660_v48 = vmul.f32 %v1411_v44, %v658_v47 }
 0xcb9   :  { %662 = vrot.lane.b32.xlu1 %v660_v48, %s1454_s10 }
 0xd2b   :  { %v663_v50 = vpop.permute.xlu1 %662 }
 0xd2c   :  { %v665_v51 = vadd.f32 %v663_v50, %v655_v49 }
 0xd2e   :  { %1412 = vtanh.f32 %v665_v51 }
 0xd38   :  { %v1413_v52 = vpop.eup %1412 }
 0xd39   :  { %668 = vrot.lane.b32.xlu0 %v1413_v52, %s1453_s2 }
 0xdab   :  { %v669_v54 = vpop.permute.xlu0 %668 }
 0xdac   :  { %v1630_v55 = vmul.f32 %v1411_v44, %v669_v54 }
 0xdae   :  { %673 = vrot.lane.b32.xlu1 %v1630_v55, %s1454_s10 }
 0xe20   :  { %v674_v57 = vpop.permute.xlu1 %673 }
 0xe21   :  { %1306 = vmatmul.mubr.msk.f32.vlgmr.msra.gmra.mrb[6].mxu1 %vm168_vm2, %v674_v57 }
 0xe22   :  { %1374 = vmatpush3.bf16.msra.mxu1 %v1503_v5  ;;  %1327 = vmatprep.mubr.msk.f32.mxu1 %vm1451_vm1, %v1452_v4 }
 0xe23   :  { %1375 = vmatprep.subr.bf16.mxu1 %v1450_v0 }
 0xe26   :  { %1377 = vmatpush3.bf16.msra.mxu1 %v1519_v10 }
 0xef4   :  { %v743_v60 = vpop.f32.mrb[6].mxu1 }
 0xef5   :  { %v747_v61 = vadd.f32 %v1584_v56, %v743_v60  ;;  %v1307_v62 = vpop.f32.mrb[7].mxu1 }
 0xef7   :  { %v1168_v63 = vmul.f32 -1.442695, %v747_v61 }
 0xef9   :  { %1414 = vpow2.f32 %v1168_v63 }
 0xf03   :  { %v1415_v1 = vpop.eup %1414 }
 0xf04   :  { %v751_v2 = vadd.f32 1.0, %v1415_v1 }
 0xf06   :  { %1416 = vrcp.f32 %v751_v2 }
 0xf10   :  { %v1417_v3 = vpop.eup %1416 }
 0xf11   :  { %v754_v6 = vmul.f32 2.0, %v1417_v3  ;;  %v756_v0 = vmul.f32 %v1417_v3, %v665_v51 }
 0xf13   :  { %v1169_v7 = vadd.f32 -1.0, %v754_v6 }
 0xf15   :  { %758 = vrot.lane.b32.xlu0 %v1169_v7, %s1453_s2 }
 0xf87   :  { %v759_v5 = vpop.permute.xlu0 %758 }
 0xf88   :  { %v761_v4 = vmul.f32 %v1417_v3, %v759_v5 }
 0xf8a   :  { %763 = vrot.lane.b32.xlu1 %v761_v4, %s1454_s10 }
 0xffc   :  { %v764_v10 = vpop.permute.xlu1 %763 }
 0xffd   :  { %v766_v8 = vadd.f32 %v764_v10, %v756_v0 }
 0xfff   :  { %1418 = vtanh.f32 %v766_v8 }
0x1009   :  { %v1419_v56 = vpop.eup %1418 }
0x100a   :  { %769 = vrot.lane.b32.xlu0 %v1419_v56, %s1453_s2 }
0x107c   :  { %v770_v9 = vpop.permute.xlu0 %769 }
0x107d   :  { %v1644_v11 = vmul.f32 %v1417_v3, %v770_v9 }
0x107f   :  { %774 = vrot.lane.b32.xlu1 %v1644_v11, %s1454_s10 }
0x10f1   :  { %v775_v12 = vpop.permute.xlu1 %774 }
0x10f2   :  { %1317 = vmatmul.mubr.msk.f32.vlgmr.msra.gmra.mrb[12].mxu0 %vm168_vm2, %v775_v12 }
0x11c5   :  { %v844_v13 = vpop.f32.mrb[12].mxu0 }
0x11c6   :  { %v848_v14 = vadd.f32 %v844_v13, %v1590_v59  ;;  %v1318_v15 = vpop.f32.mrb[13].mxu0 }
0x11c7   :  { %v1176_v15 = vld [vmem:[%s1723_s3] ss:$0 sm:$0xff] }
0x11c8   :  { %v1171_v16 = vmul.f32 -1.442695, %v848_v14  ;;  %v1177_v14 = vld [vmem:[%s1722_s4] ss:$0 sm:$0xff] }
0x11ca   :  { %1420 = vpow2.f32 %v1171_v16 }
0x11d4   :  { %v1421_v18 = vpop.eup %1420 }
0x11d5   :  { %v852_v19 = vadd.f32 1.0, %v1421_v18 }
0x11d7   :  { %1422 = vrcp.f32 %v852_v19 }
0x11e1   :  { %v1423_v20 = vpop.eup %1422 }
0x11e2   :  { %v855_v21 = vmul.f32 2.0, %v1423_v20  ;;  %v857_v25 = vmul.f32 %v1423_v20, %v766_v8 }
0x11e4   :  { %v1172_v22 = vadd.f32 -1.0, %v855_v21 }
0x11e6   :  { %859 = vrot.lane.b32.xlu0 %v1172_v22, %s1453_s2 }
0x1258   :  { %v860_v23 = vpop.permute.xlu0 %859 }
0x1259   :  { %v862_v24 = vmul.f32 %v1423_v20, %v860_v23 }
0x125b   :  { %864 = vrot.lane.b32.xlu1 %v862_v24, %s1454_s10 }
0x12cd   :  { %v865_v26 = vpop.permute.xlu1 %864 }
0x12ce   :  { %v867_v27 = vadd.f32 %v865_v26, %v857_v25 }
0x12d0   :  { %1424 = vtanh.f32 %v867_v27 }
0x12da   :  { %v1425_v59 = vpop.eup %1424 }
0x12db   :  { %870 = vrot.lane.b32.xlu0 %v1425_v59, %s1453_s2 }
0x134d   :  { %v871_v28 = vpop.permute.xlu0 %870 }
0x134e   :  { %v1653_v30 = vmul.f32 %v1423_v20, %v871_v28 }
0x1350   :  { %875 = vrot.lane.b32.xlu1 %v1653_v30, %s1454_s10 }
0x13c2   :  { %v876_v31 = vpop.permute.xlu1 %875 }
0x13c3   :  { %1328 = vmatmul.mubr.msk.f32.vlgmr.msra.gmra.mrb[8].mxu1 %vm168_vm2, %v876_v31 }
0x1496   :  { %v945_v32 = vpop.f32.mrb[8].mxu1 }
0x1497   :  { %v949_v33 = vadd.f32 %v1588_v58, %v945_v32  ;;  %v1329_v34 = vpop.f32.mrb[9].mxu1 }
0x1499   :  { %v1174_v35 = vmul.f32 -1.442695, %v949_v33 }
0x149b   :  { %1426 = vpow2.f32 %v1174_v35 }
0x14a5   :  { %v1427_v37 = vpop.eup %1426 }
0x14a6   :  { %v953_v38 = vadd.f32 1.0, %v1427_v37 }
0x14a8   :  { %1428 = vrcp.f32 %v953_v38 }
0x14b2   :  { %v1429_v39 = vpop.eup %1428 }
0x14b3   :  { %v956_v40 = vmul.f32 2.0, %v1429_v39  ;;  %v958_v44 = vmul.f32 %v1429_v39, %v867_v27 }
0x14b5   :  { %v1175_v41 = vadd.f32 -1.0, %v956_v40 }
0x14b7   :  { %960 = vrot.lane.b32.xlu0 %v1175_v41, %s1453_s2 }
0x1529   :  { %v961_v42 = vpop.permute.xlu0 %960 }
0x152a   :  { %v963_v43 = vmul.f32 %v1429_v39, %v961_v42 }
0x152c   :  { %965 = vrot.lane.b32.xlu1 %v963_v43, %s1454_s10 }
0x159e   :  { %v966_v45 = vpop.permute.xlu1 %965 }
0x159f   :  { %v968_v46 = vadd.f32 %v966_v45, %v958_v44 }
0x15a1   :  { %1430 = vtanh.f32 %v968_v46 }
0x15ab   :  { %v1431_v58 = vpop.eup %1430 }
0x15ac   :  { %971 = vrot.lane.b32.xlu0 %v1431_v58, %s1453_s2 }
0x161e   :  { %v972_v47 = vpop.permute.xlu0 %971 }
0x161f   :  { %v1662_v48 = vmul.f32 %v1429_v39, %v972_v47 }
0x1621   :  { %v983_v49 = vmul.f32 %v1662_v48, %v1580_v53  ;;  %v975_v50 = vmul.f32 %v1662_v48, %v1540_v29  ;;  %v999_v51 = vmul.f32 %v1662_v48, %v1616_v36  ;;  %v991_v52 = vmul.f32 %v1662_v48, %v1602_v17 }
0x1622   :  { %v1015_v54 = vmul.f32 %v1662_v48, %v1644_v11  ;;  %v1007_v57 = vmul.f32 %v1662_v48, %v1630_v55  ;;  %v1031_v60 = vmul.f32 %v1662_v48, %v1662_v48  ;;  %v1023_v61 = vmul.f32 %v1662_v48, %v1653_v30 }
0x1623   :  { %985 = vrot.lane.b32.xlu0 %v983_v49, %s1454_s10  ;;  %977 = vrot.lane.b32.xlu1 %v975_v50, %s1454_s10 }
0x1627   :  { %1001 = vrot.lane.b32.xlu0 %v999_v51, %s1454_s10  ;;  %993 = vrot.lane.b32.xlu1 %v991_v52, %s1454_s10 }
0x162b   :  { %1017 = vrot.lane.b32.xlu0 %v1015_v54, %s1454_s10  ;;  %1009 = vrot.lane.b32.xlu1 %v1007_v57, %s1454_s10 }
0x162f   :  { %1033 = vrot.lane.b32.xlu0 %v1031_v60, %s1454_s10  ;;  %1025 = vrot.lane.b32.xlu1 %v1023_v61, %s1454_s10 }
0x1695   :  { %v986_v62 = vpop.permute.xlu0 %985  ;;  %v978_v63 = vpop.permute.xlu1 %977 }
0x1696   :  { %v988_v1 = vsel %vm168_vm2, %v986_v62, 0.0  ;;  %v980_v2 = vsel %vm168_vm2, %v978_v63, 0.0 }
0x1697   :  { %989 = vadd.xlane.f32.xlu0 %v988_v1  ;;  %981 = vadd.xlane.f32.xlu1 %v980_v2 }
0x1699   :  { %v1002_v3 = vpop.permute.xlu0 %1001  ;;  %v994_v6 = vpop.permute.xlu1 %993 }
0x169a   :  { %v1004_v7 = vsel %vm168_vm2, %v1002_v3, 0.0  ;;  %v996_v5 = vsel %vm168_vm2, %v994_v6, 0.0 }
0x169b   :  { %1005 = vadd.xlane.f32.xlu1 %v1004_v7  ;;  %997 = vadd.xlane.f32.xlu0 %v996_v5 }
0x169d   :  { %v1018_v4 = vpop.permute.xlu0 %1017  ;;  %v1010_v0 = vpop.permute.xlu1 %1009 }
0x169e   :  { %v1020_v10 = vsel %vm168_vm2, %v1018_v4, 0.0  ;;  %v1012_v8 = vsel %vm168_vm2, %v1010_v0, 0.0 }
0x169f   :  { %1021 = vadd.xlane.f32.xlu1 %v1020_v10  ;;  %1013 = vadd.xlane.f32.xlu0 %v1012_v8 }
0x16a1   :  { %v1034_v56 = vpop.permute.xlu0 %1033  ;;  %v1026_v9 = vpop.permute.xlu1 %1025 }
0x16a2   :  { %v1036_v12 = vsel %vm168_vm2, %v1034_v56, 0.0  ;;  %v1028_v13 = vsel %vm168_vm2, %v1026_v9, 0.0 }
0x16a3   :  { %1037 = vadd.xlane.f32.xlu1 %v1036_v12  ;;  %1029 = vadd.xlane.f32.xlu0 %v1028_v13 }
0x16b4   :  { %1119 = vrot.lane.b32.xlu1 %v1177_v14, %s1455_s24 }
0x16b9   :  { %1109 = vrot.lane.b32.xlu0 %v1176_v15, %s1455_s24 }
0x1724   :  { %v990_v16 = vpop.xlane.xlu0 %989  ;;  %v982_v18 = vpop.xlane.xlu1 %981 }
0x1725   :  { %v1039_v19 = vmax.f32 %v982_v18, %v990_v16 }
0x1728   :  { %v998_v20 = vpop.xlane.xlu0 %997  ;;  %v1006_v21 = vpop.xlane.xlu1 %1005 }
0x1729   :  { %v1040_v22 = vmax.f32 %v1039_v19, %v998_v20 }
0x172b   :  { %v1041_v23 = vmax.f32 %v1040_v22, %v1006_v21 }
0x172c   :  { %v1014_v24 = vpop.xlane.xlu0 %1013  ;;  %v1022_v25 = vpop.xlane.xlu1 %1021 }
0x172d   :  { %v1042_v26 = vmax.f32 %v1041_v23, %v1014_v24 }
0x172f   :  { %v1043_v27 = vmax.f32 %v1042_v26, %v1022_v25 }
0x1730   :  { %v1030_v59 = vpop.xlane.xlu0 %1029  ;;  %v1038_v31 = vpop.xlane.xlu1 %1037 }
0x1731   :  { %v1044_v28 = vmax.f32 %v1043_v27, %v1030_v59 }
0x1733   :  { %v1045_v32 = vmax.f32 %v1044_v28, %v1038_v31 }
0x1734   :  { %v1120_v27 = vpop.permute.xlu1 %1119 }
0x1735   :  { %v1046_v33 = vsub.f32 %v982_v18, %v1045_v32  ;;  %v1049_v34 = vsub.f32 %v990_v16, %v1045_v32  ;;  %v1052_v35 = vsub.f32 %v998_v20, %v1045_v32  ;;  %v1055_v37 = vsub.f32 %v1006_v21, %v1045_v32 }
0x1736   :  { %v1058_v41 = vsub.f32 %v1014_v24, %v1045_v32  ;;  %v1061_v43 = vsub.f32 %v1022_v25, %v1045_v32  ;;  %v1064_v45 = vsub.f32 %v1030_v59, %v1045_v32  ;;  %v1067_v58 = vsub.f32 %v1038_v31, %v1045_v32  ;;  %v1110_v59 = vpop.permute.xlu0 %1109 }
0x1737   :  { %v1047_v38 = vmul.f32 1.442695, %v1046_v33  ;;  %v1050_v39 = vmul.f32 1.442695, %v1049_v34  ;;  %v1053_v40 = vmul.f32 1.442695, %v1052_v35 }
0x1738   :  { %v1056_v42 = vmul.f32 1.442695, %v1055_v37  ;;  %v1059_v44 = vmul.f32 1.442695, %v1058_v41  ;;  %v1062_v46 = vmul.f32 1.442695, %v1061_v43 }
0x1739   :  { %1432 = vpow2.f32 %v1047_v38  ;;  %v1065_v47 = vmul.f32 1.442695, %v1064_v45  ;;  %v1068_v49 = vmul.f32 1.442695, %v1067_v58 }
0x173a   :  { %1434 = vpow2.f32 %v1050_v39 }
0x173b   :  { %1436 = vpow2.f32 %v1053_v40 }
0x173c   :  { %1438 = vpow2.f32 %v1056_v42 }
0x173d   :  { %1440 = vpow2.f32 %v1059_v44 }
0x173e   :  { %1442 = vpow2.f32 %v1062_v46 }
0x173f   :  { %1444 = vpow2.f32 %v1065_v47 }
0x1740   :  { %1446 = vpow2.f32 %v1068_v49 }
0x1743   :  { %v1433_v50 = vpop.eup %1432 }
0x1744   :  { %v1435_v51 = vpop.eup %1434 }
0x1745   :  { %v1070_v52 = vadd.f32 %v1435_v51, %v1433_v50  ;;  %v1437_v54 = vpop.eup %1436 }
0x1746   :  { %v1439_v60 = vpop.eup %1438 }
0x1747   :  { %v1071_v57 = vadd.f32 %v1437_v54, %v1070_v52  ;;  %v1441_v62 = vpop.eup %1440 }
0x1748   :  { %v1443_v1 = vpop.eup %1442 }
0x1749   :  { %v1072_v61 = vadd.f32 %v1439_v60, %v1071_v57  ;;  %v1445_v3 = vpop.eup %1444 }
0x174a   :  { %v1447_v7 = vpop.eup %1446 }
0x174b   :  { %v1073_v63 = vadd.f32 %v1441_v62, %v1072_v61 }
0x174d   :  { %v1074_v2 = vadd.f32 %v1443_v1, %v1073_v63 }
0x174f   :  { %v1075_v6 = vadd.f32 %v1445_v3, %v1074_v2 }
0x1751   :  { %v1076_v5 = vadd.f32 %v1447_v7, %v1075_v6 }
0x1753   :  { %1448 = vrcp.f32 %v1076_v5 }
0x175d   :  { %v1449_v4 = vpop.eup %1448 }
0x175e   :  { %v1079_v0 = vmul.f32 %v1449_v4, %v1433_v50  ;;  %v1082_v10 = vmul.f32 %v1449_v4, %v1435_v51  ;;  %v1085_v8 = vmul.f32 %v1449_v4, %v1437_v54  ;;  %v1088_v12 = vmul.f32 %v1449_v4, %v1439_v60 }
0x175f   :  { %v1091_v15 = vmul.f32 %v1449_v4, %v1441_v62  ;;  %v1094_v19 = vmul.f32 %v1449_v4, %v1443_v1  ;;  %v1097_v22 = vmul.f32 %v1449_v4, %v1445_v3  ;;  %v1100_v25 = vmul.f32 %v1449_v4, %v1447_v7 }
0x1760   :  { %v1080_v56 = vmul.f32 %v1079_v0, %v1540_v29  ;;  %v1083_v9 = vmul.f32 %v1082_v10, %v1580_v53  ;;  %v1086_v14 = vmul.f32 %v1085_v8, %v1602_v17  ;;  %v1089_v18 = vmul.f32 %v1088_v12, %v1616_v36 }
0x1761   :  { %v1092_v21 = vmul.f32 %v1091_v15, %v1630_v55  ;;  %v1095_v24 = vmul.f32 %v1094_v19, %v1644_v11  ;;  %v11_v29 = vstv %s1724_s5  ;;  %v1098_v17 = vmul.f32 %v1097_v22, %v1653_v30 }
0x1762   :  { %v1084_v13 = vadd.f32 %v1083_v9, %v1080_v56  ;;  %12 = vst [vmem:[#allocation2] sm:$0x1] %v11_v29  ;;  %v1101_v36 = vmul.f32 %v1100_v25, %v1662_v48  ;;  %v1122_v55 = vmul.f32 %v1120_v27, %v1662_v48 }
0x1764   :  { %v1087_v16 = vadd.f32 %v1086_v14, %v1084_v13 }
0x1766   :  { %v1090_v20 = vadd.f32 %v1089_v18, %v1087_v16 }
0x1768   :  { %v1093_v23 = vadd.f32 %v1092_v21, %v1090_v20 }
0x1769   :  { %v1178_v34 = vld [vmem:[#allocation2] ss:$0 sm:$0xff] }
0x176a   :  { %v1096_v53 = vadd.f32 %v1095_v24, %v1093_v23 }
0x176c   :  { %v1099_v26 = vadd.f32 %v1098_v17, %v1096_v53 }
0x176e   :  { %v1102_v28 = vadd.f32 %v1101_v36, %v1099_v26 }
0x1770   :  { %v1112_v31 = vmul.f32 %v1110_v59, %v1102_v28 }
0x1772   :  { %v1123_v32 = vadd.f32 %v1122_v55, %v1112_v31 }
0x1774   :  { %1125 = vrot.lane.b32.xlu1 %v1123_v32, %s1454_s10 }
0x17e6   :  { %v1126_v11 = vpop.permute.xlu1 %1125 }
0x17e7   :  { %v1128_v33 = vsel %vm168_vm2, %v1126_v11, 0.0 }
0x17e8   :  { %1129 = vadd.xlane.f32.xlu0 %v1128_v33 }
0x1875   :  { %v1130_v30 = vpop.xlane.xlu0 %1129 }
0x1876   :  { %v1138_v35 = vadd.f32 %v1178_v34, %v1130_v30 }
0x1878   :  { %1140 = vst.msk [vmem:[%s1725_s6] sm:$0xff] %vm1139_vm3, %v1138_v35 }

</bundles_post_ra>
